<compile_context>
chip_gen: v6e
topology: v6e:2x2x1
jax: 0.10.0
libtpu: 0.0.40
codegen_flags: <defaults>
</compile_context>

<pallas_src>
import functools

import jax
import jax.numpy as jnp
from jax.experimental import pallas as pl
from jax.experimental.pallas import tpu as pltpu

LANES = 128
SUBLANES = 8
MAX_BLOCK_ROWS = 8192               # 8192 x 128 f32 = 4 MiB per input block
VMEM_LIMIT_BYTES = 48 * 1024 * 1024


def _bce_blur_kernel(pred_ref, true_ref, out_ref, *,
                     inv_alpha_eps, nblocks_half, first_masked_block,
                     block_elems, n_valid):
    c = pl.program_id(0)             # TensorCore split axis ("parallel")
    i = pl.program_id(1)             # per-core block loop ("arbitrary")
    gb = c * nblocks_half + i        # global (un-clamped) block index

    @pl.when(i == 0)
    def _init():
        out_ref[...] = jnp.zeros_like(out_ref)

    x = pred_ref[...].astype(jnp.float32)
    y = true_ref[...].astype(jnp.float32)

    # Shared transcendental: e = exp(-|x|).
    e = jnp.exp(-jnp.abs(x))
    # Numerically-stable BCE-with-logits (matches torch.nn.BCEWithLogitsLoss).
    loss = jnp.maximum(x, 0.0) - x * y + jnp.log1p(e)
    # sigmoid(x) reusing e -> no second exp.  Exact divide kept on purpose
    # (approx reciprocal error is amplified ~19.6x by the blur exponent).
    inv_1pe = 1.0 / (1.0 + e)
    p = jnp.where(x >= 0.0, inv_1pe, e * inv_1pe)
    dx = p - y
    loss = loss * (1.0 - jnp.exp((dx - 1.0) * inv_alpha_eps))

    def _partial_sum(v):
        r, cols = v.shape
        # (r,128) -> (r/8, 8, 128); leading-axis reduce = plain vector adds.
        return jnp.sum(v.reshape(r // SUBLANES, SUBLANES, cols), axis=0)

    if first_masked_block < 2 * nblocks_half:
        # At least one grid step can see padded / out-of-range elements.
        @pl.when(gb < first_masked_block)
        def _full():
            out_ref[0] += _partial_sum(loss)

        @pl.when(gb >= first_masked_block)
        def _masked():
            r, cols = loss.shape
            row_ids = jax.lax.broadcasted_iota(jnp.int32, (r, cols), 0)
            col_ids = jax.lax.broadcasted_iota(jnp.int32, (r, cols), 1)
            in_block_idx = row_ids * cols + col_ids
            # Valid element count inside this block (<= 0 for fully padded
            # over-cover blocks).  Garbage lanes from a partial edge block
            # cannot leak: jnp.where is a lane select, not arithmetic.
            valid = n_valid - gb * block_elems
            out_ref[0] += _partial_sum(jnp.where(in_block_idx < valid, loss, 0.0))
    else:
        out_ref[0] += _partial_sum(loss)


def bce_blur_with_logits_loss(pred, true, alpha=0.05,
                              max_block_rows=MAX_BLOCK_ROWS):
    assert pred.shape == true.shape
    n = pred.size
    assert n > 0

    rows = -(-n // LANES)                        # ceil(n / 128)
    pred_flat = pred.reshape(-1)
    true_flat = true.reshape(-1)
    if rows * LANES != n:
        # Not lane-aligned: a pad copy is unavoidable, so round the row count
        # up to a sublane multiple while we are at it.
        rows = -(-rows // SUBLANES) * SUBLANES
        pad = rows * LANES - n
        pred_flat = jnp.pad(pred_flat, (0, pad))
        true_flat = jnp.pad(true_flat, (0, pad))
    pred2d = pred_flat.reshape(rows, LANES)
    true2d = true_flat.reshape(rows, LANES)

    # Block rows: multiple of 8, capped by max_block_rows, no bigger than the
    # (sublane-rounded) array itself.
    block_rows = min(max_block_rows, -(-rows // SUBLANES) * SUBLANES)
    block_rows = max(SUBLANES, block_rows - block_rows % SUBLANES)
    block_elems = block_rows * LANES

    nblocks_real = -(-rows // block_rows)        # blocks actually in the array
    nblocks_half = -(-nblocks_real // 2)         # per-core trip count (2 TCs)
    first_masked_block = n // block_elems        # first block needing the mask

    kernel = functools.partial(
        _bce_blur_kernel,
        inv_alpha_eps=1.0 / (alpha + 1e-4),
        nblocks_half=nblocks_half,
        first_masked_block=first_masked_block,
        block_elems=block_elems,
        n_valid=n,                               # int32 in-kernel; fine for n < 2^31
    )

    def in_map(c, i):
        # Clamp so the (at most one) over-cover step re-reads the last real
        # block; its contribution is masked to zero inside the kernel.
        return (jnp.minimum(c * nblocks_half + i, nblocks_real - 1), 0)

    partials = pl.pallas_call(
        kernel,
        out_shape=jax.ShapeDtypeStruct((2, SUBLANES, LANES), jnp.float32),
        grid=(2, nblocks_half),
        in_specs=[
            pl.BlockSpec((block_rows, LANES), in_map),
            pl.BlockSpec((block_rows, LANES), in_map),
        ],
        out_specs=pl.BlockSpec((1, SUBLANES, LANES), lambda c, i: (c, 0, 0)),
        compiler_params=pltpu.CompilerParams(
            dimension_semantics=("parallel", "arbitrary"),
            vmem_limit_bytes=VMEM_LIMIT_BYTES),
    )(pred2d, true2d)

    # Tiny final reduce (2*8*128 f32) + mean scale, left to XLA.
    return jnp.sum(partials) * jnp.float32(1.0 / n)


def _reference(pred, true, alpha=0.05):
    x = pred.astype(jnp.float32)
    y = true.astype(jnp.float32)
    loss = jnp.maximum(x, 0.0) - x * y + jnp.log1p(jnp.exp(-jnp.abs(x)))
    p = jax.nn.sigmoid(x)
    dx = p - y
    loss = loss * (1.0 - jnp.exp((dx - 1.0) / (alpha + 1e-4)))
    return jnp.mean(loss)


if __name__ == "__main__":
    key = jax.random.PRNGKey(0)
    ks = jax.random.split(key, 10)

    def check(pred, true, alpha=0.05, **kw):
        out = jax.block_until_ready(
            bce_blur_with_logits_loss(pred, true, alpha=alpha, **kw))
        ref = _reference(pred, true, alpha=alpha)
        assert jnp.allclose(out, ref, rtol=1e-5, atol=1e-6), (out, ref)

    # Main case (NCHW, lane/sublane aligned -> zero-copy path).
    pred = jax.random.normal(ks[0], (2, 4, 16, 16), dtype=jnp.float32)
    true = (jax.random.uniform(ks[1], (2, 4, 16, 16)) > 0.5).astype(jnp.float32)
    check(pred, true)

    # bf16 inputs end-to-end (halves HBM traffic on v5e/v6e); f32 math in-kernel.
    check(pred.astype(jnp.bfloat16), true.astype(jnp.bfloat16))

    # Ragged element count (exercises lane pad + masked last block).
    pred_r = jax.random.normal(ks[2], (2, 3, 7, 5), dtype=jnp.float32)
    true_r = (jax.random.uniform(ks[3], (2, 3, 7, 5)) > 0.5).astype(jnp.float32)
    check(pred_r, true_r)

    # Lane-aligned but rows not a sublane multiple (partial edge block, no pad copy).
    pred_s = jax.random.normal(ks[4], (2, 1, 3, 128), dtype=jnp.float32)
    true_s = (jax.random.uniform(ks[5], (2, 1, 3, 128)) > 0.5).astype(jnp.float32)
    check(pred_s, true_s)

    # Multi-block, odd real block count (exercises the 2-core split bookkeeping,
    # per-core accumulation and the fully-masked over-cover block).
    pred_m = jax.random.normal(ks[6], (4, 4, 32, 36), dtype=jnp.float32)
    true_m = (jax.random.uniform(ks[7], (4, 4, 32, 36)) > 0.5).astype(jnp.float32)
    check(pred_m, true_m, max_block_rows=16)

    # Multi-block with a ragged tail.
    pred_t = jax.random.normal(ks[8], (3, 5, 7, 11), dtype=jnp.float32)
    true_t = (jax.random.uniform(ks[9], (3, 5, 7, 11)) > 0.5).astype(jnp.float32)
    check(pred_t, true_t, max_block_rows=8)

    print("KERNEL_OK")
</pallas_src>

<mosaic_0001>
module attributes {stable_mosaic.version = 11 : i64} {
  func.func @_bce_blur_kernel(%arg0: i32, %arg1: i32, %arg2: memref<16x128xf32, #tpu.memory_space<vmem>>, %arg3: memref<16x128xf32, #tpu.memory_space<vmem>>, %arg4: memref<1x8x128xf32, #tpu.memory_space<vmem>>) attributes {dimension_semantics = [#tpu.dimension_semantics<parallel>, #tpu.dimension_semantics<arbitrary>], iteration_bounds = array<i64: 2, 1>, scalar_prefetch = 0 : i64, scratch_operands = 0 : i64, tpu.core_type = #tpu.core_type<tc>, window_params = [{transform_indices = @transform_0, window_bounds = array<i64: 16, 128>}, {transform_indices = @transform_1, window_bounds = array<i64: 16, 128>}, {transform_indices = @transform_2, window_bounds = array<i64: 1, 8, 128>}]} {
    %c1_i32 = arith.constant 1 : i32
    %0 = arith.muli %arg0, %c1_i32 : i32
    %1 = arith.addi %0, %arg1 : i32
    %c0_i32 = arith.constant 0 : i32
    %2 = arith.cmpi eq, %arg1, %c0_i32 : i32
    %3 = arith.extui %2 : i1 to i32
    %c0_i32_0 = arith.constant 0 : i32
    %4 = arith.cmpi ne, %3, %c0_i32_0 : i32
    scf.if %4 {
      %cst_15 = arith.constant 0.000000e+00 : f32
      %40 = vector.broadcast %cst_15 : f32 to vector<1x8x128xf32>
      %c0_16 = arith.constant 0 : index
      %c0_17 = arith.constant 0 : index
      %c0_18 = arith.constant 0 : index
      %41 = vector.load %arg4[%c0_16, %c0_17, %c0_18] : memref<1x8x128xf32, #tpu.memory_space<vmem>>, vector<1x8x128xf32>
      tpu.vector_store %arg4[%c0_16, %c0_17, %c0_18], %40 {strides = array<i32>} : memref<1x8x128xf32, #tpu.memory_space<vmem>>, vector<1x8x128xf32>,
    } else {
    }
    %c0 = arith.constant 0 : index
    %c0_1 = arith.constant 0 : index
    %5 = vector.load %arg2[%c0, %c0_1] : memref<16x128xf32, #tpu.memory_space<vmem>>, vector<16x128xf32>
    %c0_2 = arith.constant 0 : index
    %c0_3 = arith.constant 0 : index
    %6 = vector.load %arg3[%c0_2, %c0_3] : memref<16x128xf32, #tpu.memory_space<vmem>>, vector<16x128xf32>
    %7 = math.absf %5 : vector<16x128xf32>
    %cst = arith.constant 0.000000e+00 : f32
    %8 = vector.broadcast %cst : f32 to vector<16x128xf32>
    %9 = arith.subf %8, %7 : vector<16x128xf32>
    %10 = math.exp %9 : vector<16x128xf32>
    %cst_4 = arith.constant 0.000000e+00 : f32
    %11 = vector.broadcast %cst_4 : f32 to vector<16x128xf32>
    %12 = arith.maximumf %5, %11 : vector<16x128xf32>
    %13 = arith.mulf %5, %6 : vector<16x128xf32>
    %14 = arith.subf %12, %13 : vector<16x128xf32>
    %15 = math.log1p %10 : vector<16x128xf32>
    %16 = arith.addf %14, %15 : vector<16x128xf32>
    %cst_5 = arith.constant 1.000000e+00 : f32
    %17 = vector.broadcast %cst_5 : f32 to vector<16x128xf32>
    %18 = arith.addf %17, %10 : vector<16x128xf32>
    %cst_6 = arith.constant 1.000000e+00 : f32
    %19 = vector.broadcast %cst_6 : f32 to vector<16x128xf32>
    %20 = arith.divf %19, %18 : vector<16x128xf32>
    %cst_7 = arith.constant 0.000000e+00 : f32
    %21 = vector.broadcast %cst_7 : f32 to vector<16x128xf32>
    %22 = arith.cmpf oge, %5, %21 : vector<16x128xf32>
    %23 = arith.mulf %10, %20 : vector<16x128xf32>
    %24 = arith.select %22, %20, %23 : vector<16x128xi1>, vector<16x128xf32>
    %25 = arith.subf %24, %6 : vector<16x128xf32>
    %cst_8 = arith.constant 1.000000e+00 : f32
    %26 = vector.broadcast %cst_8 : f32 to vector<16x128xf32>
    %27 = arith.subf %25, %26 : vector<16x128xf32>
    %cst_9 = arith.constant 19.9600792 : f32
    %28 = vector.broadcast %cst_9 : f32 to vector<16x128xf32>
    %29 = arith.mulf %27, %28 : vector<16x128xf32>
    %30 = math.exp %29 : vector<16x128xf32>
    %cst_10 = arith.constant 1.000000e+00 : f32
    %31 = vector.broadcast %cst_10 : f32 to vector<16x128xf32>
    %32 = arith.subf %31, %30 : vector<16x128xf32>
    %33 = arith.mulf %16, %32 : vector<16x128xf32>
    %c1_i32_11 = arith.constant 1 : i32
    %34 = arith.cmpi slt, %1, %c1_i32_11 : i32
    %35 = arith.extui %34 : i1 to i32
    %c0_i32_12 = arith.constant 0 : i32
    %36 = arith.cmpi ne, %35, %c0_i32_12 : i32
    scf.if %36 {
      %c0_15 = arith.constant 0 : index
      %c0_16 = arith.constant 0 : index
      %c0_17 = arith.constant 0 : index
      %40 = vector.load %arg4[%c0_15, %c0_16, %c0_17] : memref<1x8x128xf32, #tpu.memory_space<vmem>>, vector<1x8x128xf32>
      %41 = vector.shape_cast %40 : vector<1x8x128xf32> to vector<8x128xf32>
      %42 = vector.shape_cast %33 : vector<16x128xf32> to vector<2x8x128xf32>
      %cst_18 = arith.constant dense<0.000000e+00> : vector<8x128xf32>
      %43 = vector.multi_reduction <add>, %42, %cst_18 [0] : vector<2x8x128xf32> to vector<8x128xf32>
      %44 = arith.addf %41, %43 : vector<8x128xf32>
      %c0_19 = arith.constant 0 : index
      %c0_20 = arith.constant 0 : index
      %c0_21 = arith.constant 0 : index
      %45 = vector.load %arg4[%c0_19, %c0_20, %c0_21] : memref<1x8x128xf32, #tpu.memory_space<vmem>>, vector<1x8x128xf32>
      %46 = vector.shape_cast %45 : vector<1x8x128xf32> to vector<8x128xf32>
      %47 = vector.shape_cast %44 : vector<8x128xf32> to vector<1x8x128xf32>
      tpu.vector_store %arg4[%c0_19, %c0_20, %c0_21], %47 {strides = array<i32>} : memref<1x8x128xf32, #tpu.memory_space<vmem>>, vector<1x8x128xf32>,
    } else {
    }
    %c1_i32_13 = arith.constant 1 : i32
    %37 = arith.cmpi sge, %1, %c1_i32_13 : i32
    %38 = arith.extui %37 : i1 to i32
    %c0_i32_14 = arith.constant 0 : i32
    %39 = arith.cmpi ne, %38, %c0_i32_14 : i32
    scf.if %39 {
      %40 = tpu.iota {dimensions = array<i32: 0>} : vector<16x128xi32>
      %41 = tpu.iota {dimensions = array<i32: 1>} : vector<16x128xi32>
      %c128_i32 = arith.constant 128 : i32
      %42 = vector.broadcast %c128_i32 : i32 to vector<16x128xi32>
      %43 = arith.muli %40, %42 : vector<16x128xi32>
      %44 = arith.addi %43, %41 : vector<16x128xi32>
      %c2048_i32 = arith.constant 2048 : i32
      %45 = arith.muli %1, %c2048_i32 : i32
      %c2048_i32_15 = arith.constant 2048 : i32
      %46 = arith.subi %c2048_i32_15, %45 : i32
      %c0_16 = arith.constant 0 : index
      %c0_17 = arith.constant 0 : index
      %c0_18 = arith.constant 0 : index
      %47 = vector.load %arg4[%c0_16, %c0_17, %c0_18] : memref<1x8x128xf32, #tpu.memory_space<vmem>>, vector<1x8x128xf32>
      %48 = vector.shape_cast %47 : vector<1x8x128xf32> to vector<8x128xf32>
      %49 = vector.broadcast %46 : i32 to vector<16x128xi32>
      %50 = arith.cmpi slt, %44, %49 : vector<16x128xi32>
      %cst_19 = arith.constant 0.000000e+00 : f32
      %51 = vector.broadcast %cst_19 : f32 to vector<16x128xf32>
      %52 = arith.select %50, %33, %51 : vector<16x128xi1>, vector<16x128xf32>
      %53 = vector.shape_cast %52 : vector<16x128xf32> to vector<2x8x128xf32>
      %cst_20 = arith.constant dense<0.000000e+00> : vector<8x128xf32>
      %54 = vector.multi_reduction <add>, %53, %cst_20 [0] : vector<2x8x128xf32> to vector<8x128xf32>
      %55 = arith.addf %48, %54 : vector<8x128xf32>
      %c0_21 = arith.constant 0 : index
      %c0_22 = arith.constant 0 : index
      %c0_23 = arith.constant 0 : index
      %56 = vector.load %arg4[%c0_21, %c0_22, %c0_23] : memref<1x8x128xf32, #tpu.memory_space<vmem>>, vector<1x8x128xf32>
      %57 = vector.shape_cast %56 : vector<1x8x128xf32> to vector<8x128xf32>
      %58 = vector.shape_cast %55 : vector<8x128xf32> to vector<1x8x128xf32>
      tpu.vector_store %arg4[%c0_21, %c0_22, %c0_23], %58 {strides = array<i32>} : memref<1x8x128xf32, #tpu.memory_space<vmem>>, vector<1x8x128xf32>,
    } else {
    }
    return
  }
  func.func @transform_0(%arg0: i32, %arg1: i32) -> (i32, i32) {
    %c1_i32 = arith.constant 1 : i32
    %0 = arith.muli %arg0, %c1_i32 : i32
    %1 = arith.addi %0, %arg1 : i32
    %c0_i32 = arith.constant 0 : i32
    %2 = arith.minsi %1, %c0_i32 : i32
    %c0_i32_0 = arith.constant 0 : i32
    %c0_i32_1 = arith.constant 0 : i32
    return %2, %c0_i32_0 : i32, i32
  }
  func.func @transform_1(%arg0: i32, %arg1: i32) -> (i32, i32) {
    %c1_i32 = arith.constant 1 : i32
    %0 = arith.muli %arg0, %c1_i32 : i32
    %1 = arith.addi %0, %arg1 : i32
    %c0_i32 = arith.constant 0 : i32
    %2 = arith.minsi %1, %c0_i32 : i32
    %c0_i32_0 = arith.constant 0 : i32
    %c0_i32_1 = arith.constant 0 : i32
    return %2, %c0_i32_0 : i32, i32
  }
  func.func @transform_2(%arg0: i32, %arg1: i32) -> (i32, i32, i32) {
    %c0_i32 = arith.constant 0 : i32
    %c0_i32_0 = arith.constant 0 : i32
    %c0_i32_1 = arith.constant 0 : i32
    return %arg0, %c0_i32, %c0_i32_0 : i32, i32, i32
  }
}

</mosaic_0001>

<bundles_post_ra>
// kernel: tpu_custom_call.1
= control target key start
LH: loop header
LB: loop body
LE: loop exit
PB: predicated region body
PF: predicated region fallthrough
CT: control target
= control target key end

     0   :  { %7 = vsyncpa [#allocation3], 0  ;;  %s973_s0 = inlined_call_operand.hbm [shape: f32[16,128], index: 0, kind: input, shape index: {}]   ;;  %s974_s1 = inlined_call_operand.hbm [shape: f32[16,128], index: 1, kind: input, shape index: {}]   ;;  %s975_s2 = inlined_call_operand.hbm [shape: f32[2,8,128], index: 2, kind: output, shape index: {}]  }
   0x1   :  { %9 = vsyncpa [#allocation3 + $0x1], 0 }
   0x2   :  { %10 = vsyncpa [#allocation6], 0 }
   0x3   :  { %12 = vsyncpa [#allocation6 + $0x1], 0 }
   0x4   :  { %13 = vsyncpa [#allocation4], 0 }
   0x5   :  { %15 = vsyncpa [#allocation4 + $0x1], 0  ;;  %s776_s9 = smov 0   ;;  %s778_s10 = smov 0  }
   0x6   :  { %s780_s11 = smov 0   ;;  %s782_s12 = smov 0  }
   0x7   :  { %s784_s13 = smov 0   ;;  %s786_s14 = smov 0  }
   0x8   :  { %s788_s15 = smov 0   ;;  %s790_s16 = smov 0  }
   0x9 LB: > { %s457_s17 = sadd.s32 4294967295, %s753_s16   ;;  %s458_s18 = sadd.s32 4294967294, %s753_s16   ;;  %s753_s16 = sphi %s790_s16, %s21_s16   ;;  %s749_s15 = sphi %s788_s15, %s994_s15   ;;  %s745_s14 = sphi %s786_s14, %s993_s14   ;;  %s741_s13 = sphi %s784_s13, %s963_s13   ;;  %s737_s12 = sphi %s782_s12, %s992_s12   ;;  %s733_s11 = sphi %s780_s11, %s991_s11   ;;  %s729_s10 = sphi %s778_s10, %s990_s10   ;;  %s725_s9 = sphi %s776_s9, %s989_s9  }
   0xa   : > { %s33_s19 = sadd.s32 1, %s749_s15  ;;  %p722_p1 = scmp.ne.s32.totalorder %s741_s13, 0 }
   0xb   : > { %p35_p0 = scmp.ge.s32.totalorder %s33_s19, 2  ;;  %p54_p2 = scmp.eq.s32.totalorder %s753_s16, 0 }
   0xc   : > { %p59_p3 = scmp.ne.s32.totalorder %s741_s13, %s737_s12  ;;  %p60_p5 = scmp.eq.s32.totalorder %s457_s17, 0 }
   0xd   : > { %s996_s19 = smov (%p35_p0, %s33_s19), 0  ;;  %p822_p4 = por %p722_p1, %p54_p2 }
   0xe   : > { %p826_p6 = por %p60_p5, %p59_p3  ;;  %s101_s22 = ssub.s32 %s749_s15, %s996_s19 }
   0xf   : > { %p102_p7 = scmp.eq.s32.totalorder %s101_s22, 0  ;;  %s104_s23 = sadd.s32 1, %s733_s11 }
  0x10   : > { %s979_s21 = scalar_select %p826_p6, 1, 0 }
  0x11   : > { %s834_s24 = scalar_select %p102_p7, %s733_s11, %s104_s23  }
  0x12   : > { %p114_p8 = scmp.ne.s32.totalorder %s733_s11, %s729_s10  ;;  %p115_p9 = scmp.eq.s32.totalorder %s457_s17, 1 }
  0x13   : > { %p120_p10 = scmp.ne.s32.totalorder %s729_s10, %s725_s9  ;;  %p121_p11 = scmp.eq.s32.totalorder %s458_s18, 1 }
  0x14   : > { %p840_p12 = por %p115_p9, %p114_p8  ;;  %p499_p1 = scmp.lt.s32.totalorder %s753_s16, 2 }
  0x15   : > { %p845_p0 = por %p121_p11, %p120_p10  ;;  %s755_s27 = smov [#allocation2]  }
  0x16   : > { %s980_s25 = scalar_select %p840_p12, 1, 0 }
  0x17   : > { %s981_s26 = scalar_select %p845_p0, 1, 0 }
  0x18   : > { %s155_s28 = sshll.u32 %s755_s27, 4  ;;  %p852_p2 = pnand %p499_p1, %p822_p4  ;;  %s156_s28 = int_to_ptr.vmem [resolvable:$true] %s155_s28 }
  0x19   : > { %s592_s4 = scalar_lea.hbm %s973_s0, 256 }
  0x1a   : > { %p593_p3 = scmp.ne.s32.totalorder %s973_s0, %s592_s4  ;;  %p594_p5 = pneg %p852_p2 }
  0x1b   : > { %p599_p8 = scmp.lt.s32.totalorder %s592_s4, %s592_s4 }
  0x1c   : > { %p595_p7 = pnand %p594_p5, %p593_p3 }
  0x1e   : > { %p596_p4 = pneg %p595_p7 }
  0x20   : > { %p601_p9 = pnand %p599_p8, %p596_p4 }
  0x22   : > { %604 = shalt.err (!%p601_p9)
}
  0x23   : > { %s605_s7 = scalar_lea.vmem %s156_s28, 256  ;;  %s612_s8 = scalar_lea.vmem %s156_s28, 512 }
  0x24   : > { %p606_p10 = scmp.ne.s32.totalorder %s156_s28, %s605_s7  ;;  %p613_p13 = scmp.lt.s32.totalorder %s156_s28, %s156_s28 }
  0x25   : > { %p614_p0 = scmp.lt.s32.totalorder %s612_s8, %s605_s7 }
  0x26   : > { %p608_p11 = pnand %p606_p10, %p594_p5 }
  0x27   : > { %p615_p12 = por %p614_p0, %p613_p13 }
  0x28   : > { %p609_p1 = pneg %p608_p11 }
  0x2a   : > { %p616_p6 = pnand %p615_p12, %p609_p1 }
  0x2c   : > { %619 = shalt.err (!%p616_p6)
}
  0x2d   : > { %s756_s12 = smov 128   ;;  %s757_s17 = smov 8  }
  0x2e   : > { %491 = dma.hbm_to_vmem [thread:$0]  (!%p852_p2), %s973_s0, 256, %s156_s28, [#allocation3], %s756_s12, %s756_s12, %s757_s17  }
  0x2f   : > { %p467_p3 = scmp.ge.s32.totalorder %s753_s16, 1  ;;  %p187_p7 = scmp.lt.s32.totalorder %s753_s16, 3 }
  0x30   : > { %s758_s23 = smov [#allocation5]   ;;  %s620_s4 = scalar_lea.hbm %s974_s1, 256 }
  0x31   : > { %p877_p4 = pnand %p467_p3, %p187_p7  ;;  %s179_s27 = sshll.u32 %s758_s23, 4  ;;  %s180_s27 = int_to_ptr.vmem [resolvable:$true] %s179_s27 }
  0x32   : > { %p621_p6 = scmp.ne.s32.totalorder %s974_s1, %s620_s4  ;;  %p627_p0 = scmp.lt.s32.totalorder %s620_s4, %s620_s4 }
  0x33   : > { %s983_s22 = scalar_select %p877_p4, 1, 0 }
  0x34   : > { %p623_p12 = pnand %p621_p6, %p594_p5 }
  0x36   : > { %p624_p13 = pneg %p623_p12 }
  0x38   : > { %p629_p8 = pnand %p627_p0, %p624_p13 }
  0x3a   : > { %632 = shalt.err (!%p629_p8)
}
  0x3b   : > { %s633_s28 = scalar_lea.vmem %s180_s27, 256  ;;  %s640_s7 = scalar_lea.vmem %s180_s27, 512 }
  0x3c   : > { %p634_p9 = scmp.ne.s32.totalorder %s180_s27, %s633_s28  ;;  %p641_p1 = scmp.lt.s32.totalorder %s180_s27, %s180_s27 }
  0x3d   : > { %p642_p3 = scmp.lt.s32.totalorder %s640_s7, %s633_s28 }
  0x3e   : > { %p636_p10 = pnand %p634_p9, %p594_p5 }
  0x3f   : > { %p643_p7 = por %p642_p3, %p641_p1 }
  0x40   : > { %p637_p11 = pneg %p636_p10 }
  0x42   : > { %p644_p4 = pnand %p643_p7, %p637_p11 }
  0x44   : > { %647 = shalt.err (!%p644_p4)
}
  0x45   : > { %494 = dma.hbm_to_vmem [thread:$0]  (!%p852_p2), %s974_s1, 256, %s180_s27, [#allocation6], %s756_s12, %s756_s12, %s757_s17  }
  0x46   : > { %p984_p6 = scmp.ne.s32.totalorder %s983_s22, 0 }
  0x47   : > { %s193_s20 = sand.u32 (!%p984_p6), 1, %s741_s13   ;;  %p985_p5 = scmp.ne.s32.totalorder (!%p984_p6), %s979_s21, 0 }
  0x48   : > { %191 = sbr.rel (%p984_p6) target bundleno = 200 (0xc8), region = 28  ;;  %s468_s23 = sshll.u32 (!%p984_p6), %s193_s20, 4 }
  0x49   : > { %s194_s30 = scalar_lea.sflag (!%p984_p6), [#allocation3], %s193_s20  ;;  %s197_s3 = scalar_lea.vmem (!%p984_p6), [#allocation2], %s468_s23 }
  0x4d   : > { %711 = dma.done.wait (%p985_p5), %s194_s30, 256  }
  0x4e   : > { %713 = vsyncadd (%p985_p5), %s194_s30, 4294967040  ;;  %s203_s29 = scalar_lea.sflag [#allocation6], %s193_s20  ;;  %s905_s4 = scalar_lea.vmem [#allocation5], %s468_s23 }
  0x4f   : > { %715 = dma.done.wait (%p985_p5), %s203_s29, 256  }
  0x50   : > { %717 = vsyncadd (%p985_p5), %s203_s29, 4294967040  ;;  %s229_s12 = sand.u32 1, %s729_s10   ;;  %v759_v0 = vmov 0.0   ;;  %v246_v1 = vld [vmem:[%s197_s3] sm:$0xff]  ;;  %v247_v2 = vld [vmem:[%s197_s3 + $0x8] sm:$0xff]  ;;  %p473_p2 = scmp.ge.s32.totalorder %s745_s14, 1 }
  0x51   : > { %s470_s17 = sshll.u32 %s229_s12, 3  ;;  %v250_v3 = vand.u32 2147483647, %v246_v1  ;;  %v251_v4 = vand.u32 2147483647, %v247_v2  ;;  %vm290_vm0 = vcmp.ge.f32.partialorder %v246_v1, 0.0 }
  0x52   : > { %s914_s22 = scalar_lea.vmem [#allocation7], %s470_s17  ;;  %v248_v15 = vld [vmem:[%s905_s4] sm:$0xff]  ;;  %vm291_vm1 = vcmp.ge.f32.partialorder %v247_v2, 0.0  ;;  %v249_v17 = vld [vmem:[%s905_s4 + $0x8] sm:$0xff]  ;;  %v258_v37 = vmax.f32 %v246_v1, 0.0  ;;  %v259_v39 = vmax.f32 %v247_v2, 0.0 }
  0x53   : > { %245 = vst [vmem:[%s914_s22] sm:$0xff] %v759_v0  ;;  %v252_v5 = vsub.f32 0.0, %v250_v3  ;;  %v253_v6 = vsub.f32 0.0, %v251_v4  ;;  %v260_v38 = vmul.f32 %v248_v15, %v246_v1  ;;  %v261_v40 = vmul.f32 %v249_v17, %v247_v2 }
  0x55   : > { %v254_v7 = vmul.f32 1.442695, %v252_v5  ;;  %v256_v8 = vmul.f32 1.442695, %v253_v6  ;;  %v262_v45 = vsub.f32 %v258_v37, %v260_v38  ;;  %v263_v46 = vsub.f32 %v259_v39, %v261_v40 }
  0x57   : > { %576 = vpow2.f32 %v254_v7 }
  0x58   : > { %578 = vpow2.f32 %v256_v8 }
  0x64   : > { %v577_v9 = vpop.eup %576 }
  0x65   : > { %v579_v10 = vpop.eup %578  ;;  %v264_v11 = vadd.f32 1.0, %v577_v9  ;;  %v267_v26 = vmul.f32 -0.5, %v577_v9  ;;  %v270_v33 = vand.u32 2147483647, %v577_v9 }
  0x66   : > { %v273_v12 = vadd.f32 1.0, %v579_v10  ;;  %v276_v28 = vmul.f32 -0.5, %v579_v10  ;;  %v279_v36 = vand.u32 2147483647, %v579_v10 }
  0x67   : > { %580 = vrcp.f32 %v264_v11  ;;  %v268_v31 = vadd.f32 1.0, %v267_v26  ;;  %vm271_vm2 = vcmp.lt.f32.partialorder %v270_v33, 0.0004427343 }
  0x68   : > { %582 = vrcp.f32 %v273_v12  ;;  %v277_v34 = vadd.f32 1.0, %v276_v28  ;;  %vm280_vm3 = vcmp.lt.f32.partialorder %v279_v36, 0.0004427343 }
  0x69   : > { %584 = vlog2.f32 %v264_v11  ;;  %v269_v42 = vmul.f32 %v577_v9, %v268_v31 }
  0x6a   : > { %586 = vlog2.f32 %v273_v12  ;;  %v278_v44 = vmul.f32 %v579_v10, %v277_v34 }
  0x74   : > { %v581_v13 = vpop.eup %580 }
  0x75   : > { %v583_v14 = vpop.eup %582  ;;  %v292_v16 = vmul.f32 %v581_v13, %v577_v9 }
  0x76   : > { %v293_v18 = vmul.f32 %v583_v14, %v579_v10  ;;  %v585_v32 = vpop.eup %584 }
  0x77   : > { %v294_v19 = vsel %vm290_vm0, %v581_v13, %v292_v16  ;;  %v587_v35 = vpop.eup %586  ;;  %v266_v41 = vmul.f32 0.6931472, %v585_v32 }
  0x78   : > { %v295_v20 = vsel %vm291_vm1, %v583_v14, %v293_v18  ;;  %v296_v21 = vsub.f32 %v294_v19, %v248_v15  ;;  %v275_v43 = vmul.f32 0.6931472, %v587_v35 }
  0x79   : > { %v297_v22 = vsub.f32 %v295_v20, %v249_v17  ;;  %v272_v47 = vsel %vm271_vm2, %v269_v42, %v266_v41 }
  0x7a   : > { %v471_v23 = vadd.f32 -1.0, %v296_v21  ;;  %v281_v48 = vsel %vm280_vm3, %v278_v44, %v275_v43  ;;  %v282_v49 = vadd.f32 %v272_v47, %v262_v45 }
  0x7b   : > { %v472_v24 = vadd.f32 -1.0, %v297_v22  ;;  %v283_v51 = vadd.f32 %v281_v48, %v263_v46 }
  0x7c   : > { %v300_v25 = vmul.f32 19.96008, %v471_v23 }
  0x7d   : > { %v301_v27 = vmul.f32 19.96008, %v472_v24 }
  0x7e   : > { %v302_v29 = vmul.f32 1.442695, %v300_v25 }
  0x7f   : > { %v304_v30 = vmul.f32 1.442695, %v301_v27 }
  0x80   : > { %588 = vpow2.f32 %v302_v29 }
  0x81   : > { %590 = vpow2.f32 %v304_v30 }
  0x8d   : > { %v589_v50 = vpop.eup %588  ;;  %313 = sbr.rel (%p473_p2) target bundleno = 152 (0x98), region = 44 }
  0x8e   : > { %v591_v52 = vpop.eup %590  ;;  %v306_v53 = vsub.f32 1.0, %v589_v50 }
  0x8f   : > { %v307_v54 = vsub.f32 1.0, %v591_v52 }
  0x90   : > { %v308_v55 = vmul.f32 %v306_v53, %v282_v49 }
  0x91   : > { %v309_v56 = vmul.f32 %v307_v54, %v283_v51 }
  0x92   : > { %v314_v57 = vld [vmem:[%s914_s22] sm:$0xff] }
  0x93   : > { %v315_v58 = vadd.f32 %v309_v56, %v308_v55 }
  0x95   : > { %v316_v59 = vadd.f32 %v315_v58, %v314_v57 }
  0x97   : > { %317 = vst [vmem:[%s914_s22] sm:$0xff] %v316_v59 }
  0x98 PF: > { %p474_p4 = scmp.lt.s32.totalorder %s745_s14, 1 }
  0x99   : > { %s475_s21 = sshll.u32 (!%p474_p4), %s745_s14, 11 }
  0x9a   : > { %321 = sbr.rel (%p474_p4) target bundleno = 176 (0xb0), region = 48  ;;  %s332_s27 = ssub.s32 (!%p474_p4), 2048, %s475_s21 }
  0x9f   : > { %v322_v60 = vlaneseq  ;;  %v334_v1 = vstv %s332_s27  ;;  %v333_v6 = vld [vmem:[%s914_s22] sm:$0xff] }
  0xa1   : > { %v323_v61 = vshrl.u32 %v322_v60, 7  ;;  %v326_v62 = vand.u32 127, %v322_v60 }
  0xa3   : > { %v324_v63 = vadd.s32 8, %v323_v61  ;;  %v327_v0 = vmul.u32 128, %v323_v61 }
  0xa5   : > { %v328_v2 = vmul.u32 128, %v324_v63  ;;  %v329_v3 = vadd.s32 %v327_v0, %v326_v62 }
  0xa7   : > { %v330_v4 = vadd.s32 %v328_v2, %v326_v62  ;;  %vm335_vm4 = vcmp.lt.s32.totalorder %v329_v3, %v334_v1 }
  0xa8   : > { %v337_v5 = vsel %vm335_vm4, %v308_v55, 0.0 }
  0xa9   : > { %vm336_vm5 = vcmp.lt.s32.totalorder %v330_v4, %v334_v1 }
  0xaa   : > { %v338_v7 = vsel %vm336_vm5, %v309_v56, 0.0 }
  0xab   : > { %v339_v8 = vadd.f32 %v338_v7, %v337_v5 }
  0xad   : > { %v340_v9 = vadd.f32 %v339_v8, %v333_v6 }
  0xaf   : > { %341 = vst [vmem:[%s914_s22] sm:$0xff] %v340_v9 }
  0xb0 PF: > { %s477_s5 = sshll.u32 %s745_s14, 7  ;;  %s356_s8 = sshll.u32 %s914_s22, 4  ;;  %s357_s8 = int_to_ptr.vmem [resolvable:$true] %s356_s8 }
  0xb1   : > { %s354_s7 = scalar_lea.hbm %s975_s2, %s477_s5  ;;  %s343_s18 = scalar_lea.sflag [#allocation4], %s229_s12 }
  0xb2   : > { %s648_s20 = scalar_lea.vmem %s357_s8, 128  ;;  %p986_p13 = scmp.ne.s32.totalorder %s980_s25, 0 }
  0xb3   : > { %p649_p12 = scmp.ne.s32.totalorder %s357_s8, %s648_s20  ;;  %s760_s23 = smov [#allocation7]  }
  0xb4   : > { %s652_s30 = sshll.u32 %s760_s23, 4  ;;  %s653_s30 = int_to_ptr.vmem [resolvable:$false] %s652_s30 }
  0xb5   : > { %p650_p0 = pnand %p649_p12, %p986_p13  ;;  %s654_s3 = scalar_lea.vmem %s653_s30, 256 }
  0xb6   : > { %p655_p9 = scmp.lt.s32.totalorder %s357_s8, %s653_s30  ;;  %p656_p10 = scmp.lt.s32.totalorder %s654_s3, %s648_s20 }
  0xb7   : > { %p651_p8 = pneg %p650_p0 }
  0xb8   : > { %p657_p11 = por %p656_p10, %p655_p9 }
  0xba   : > { %p658_p1 = pnand %p657_p11, %p651_p8 }
  0xbc   : > { %661 = shalt.err (!%p658_p1)
}
  0xbd   : > { %s662_s14 = scalar_lea.hbm %s354_s7, 128  ;;  %s666_s12 = scalar_lea.hbm %s975_s2, 256 }
  0xbe   : > { %p663_p3 = scmp.ne.s32.totalorder %s354_s7, %s662_s14  ;;  %p667_p5 = scmp.lt.s32.totalorder %s354_s7, %s975_s2 }
  0xbf   : > { %p668_p2 = scmp.lt.s32.totalorder %s666_s12, %s662_s14 }
  0xc0   : > { %p664_p7 = pnand %p663_p3, %p986_p13 }
  0xc1   : > { %p669_p4 = por %p668_p2, %p667_p5 }
  0xc2   : > { %p665_p6 = pneg %p664_p7 }
  0xc4   : > { %p670_p12 = pnand %p669_p4, %p665_p6 }
  0xc6   : > { %673 = shalt.err (!%p670_p12)
}
  0xc7   : > { %486 = dma.vmem_to_hbm [thread:$0]  (%p986_p13), %s357_s8, 128, %s354_s7, %s343_s18  }
  0xc8 PF: > { %s368_s21 = sand.u32 1, %s725_s9   ;;  %p987_p0 = scmp.ne.s32.totalorder %s981_s26, 0 }
  0xc9   : > { %p988_p8 = scmp.ge.s32.totalorder %s753_s16, 2  ;;  %s369_s27 = scalar_lea.sflag [#allocation4], %s368_s21 }
  0xcb   : > { %p496_p9 = pnand %p988_p8, %p987_p0 }
  0xcd   : > { %p497_p10 = pneg %p496_p9 }
  0xcf   : > { %719 = dma.done.wait (%p497_p10), %s369_s27, 128  }
  0xd0   : > { %721 = vsyncadd (%p497_p10), %s369_s27, 4294967168  ;;  %s21_s16 = sadd.s32 1, %s753_s16   ;;  %s989_s9 = smov %s729_s10 }
  0xd1   : > { %p18_p11 = scmp.ge.s32.totalorder %s21_s16, 4   ;;  %s990_s10 = smov %s733_s11 }
  0xd2   : > { %s991_s11 = smov %s834_s24  ;;  %s992_s12 = smov %s741_s13 }
  0xd3   : > { %s963_s13 = smov 0   ;;  %s993_s14 = smov %s749_s15 }
  0xd4   : > { %s994_s15 = smov %s996_s19  ;;  %20 = sbr.rel (!%p18_p11) target bundleno = 9 (0x9), region = 98 }
  0xd9   :  { %374 = vsyncpa [#allocation3], 1 }
  0xda   :  { %376 = vsyncpa [#allocation3 + $0x1], 1 }
  0xdb   :  { %377 = vsyncpa [#allocation6], 1 }
  0xdc   :  { %379 = vsyncpa [#allocation6 + $0x1], 1 }
  0xdd   :  { %380 = vsyncpa [#allocation4], 1 }
  0xde   :  { %382 = vsyncpa [#allocation4 + $0x1], 1 }

</bundles_post_ra>
